<compile_context>
chip_gen: v6e
topology: v6e:2x2x1
jax: 0.10.0
libtpu: 0.0.40
codegen_flags: <defaults>
</compile_context>

<pallas_src>
import math
import functools

import jax
import jax.numpy as jnp
from jax.experimental import pallas as pl
from jax.experimental.pallas import tpu as pltpu


def _round_up(x, m):
    return ((x + m - 1) // m) * m


def _cdiv(x, m):
    return (x + m - 1) // m


def _fast_mmd_kernel(z1_ref, z2_ref, w_ref, b_ref, out_ref, *,
                     tile_rows, n_rows, tiles_per_part, needs_mask):
    """One grid step: a (tile_rows, F_in) slice of z1 and the same slice of z2.

    out_ref is this part's resident (1, 1, F_out) partial accumulator holding
    colsum(cos(z1 w + b)) - colsum(cos(z2 w + b)) over the rows seen so far.
    The row reduction runs on the MXU so the VPU only carries the cos
    polynomial and one subtract.
    """
    p = pl.program_id(0)
    i = pl.program_id(1)

    @pl.when(i == 0)
    def _init():
        out_ref[...] = jnp.zeros_like(out_ref)

    w = w_ref[...]
    b = b_ref[...]
    # (tile_rows, F_in) @ (F_in, F_out) on the MXU, f32 accumulation. Default
    # Mosaic f32 matmul precision stays within 1e-5 of the f32 reference for
    # moderate F_in; for very large F_in consider precision=HIGHEST here.
    proj1 = jnp.dot(z1_ref[...], w, preferred_element_type=jnp.float32) + b
    proj2 = jnp.dot(z2_ref[...], w, preferred_element_type=jnp.float32) + b
    diff = jnp.cos(proj1) - jnp.cos(proj2)                 # (tile_rows, F_out)

    if needs_mask:
        # Ragged last tile: rows past n_rows hold undefined block padding, so
        # zero their contribution before the reduction (NaN-safe select).
        row0 = (p * tiles_per_part + i) * tile_rows
        rows = row0 + jax.lax.broadcasted_iota(jnp.int32, (tile_rows, 1), 0)
        diff = jnp.where(rows < n_rows, diff, 0.0)

    # Row reduction on the MXU: (1, tile_rows) @ (tile_rows, F_out).
    ones = jnp.ones((1, tile_rows), jnp.float32)
    red = jnp.dot(ones, diff, preferred_element_type=jnp.float32)  # (1, F_out)
    out_ref[...] += red.reshape(1, 1, red.shape[-1])


def fast_mmd(z1, z2, w, b, *, gamma, tile_rows=None):
    """Pallas Fast_MMD. z1, z2: (N, F_in); w: (F_in, F_out); b: (F_out,)."""
    n, f_in = z1.shape
    f_out = w.shape[1]
    assert z2.shape == z1.shape and w.shape == (f_in, f_out)

    inner_scale = math.sqrt(2.0 / gamma)
    outer_scale = math.sqrt(2.0 / f_out)

    # Fold the inner scale into the parameters once (O(F_in*F_out) wrapper
    # work instead of O(N*F_out) per-element multiplies in the hot loop).
    w_s = w.astype(jnp.float32) * jnp.float32(inner_scale)
    b_s = (b.astype(jnp.float32) * jnp.float32(inner_scale)).reshape(1, f_out)
    z1 = z1.astype(jnp.float32)
    z2 = z2.astype(jnp.float32)

    if tile_rows is None:
        # Big tiles to amortize per-grid-step overhead; 512 rows of z is only
        # tile_rows*F_in*4 bytes per buffer, trivially within VMEM.
        tile_rows = min(_round_up(n, 8), 512)
    tile_rows = max(8, _round_up(tile_rows, 8))

    num_tiles = _cdiv(n, tile_rows)
    # Leading "parallel" axis lets v7x's two TensorCores split the row tiles.
    # Only used when the tiles divide evenly so no block index goes fully OOB.
    num_parts = 2 if (num_tiles >= 2 and num_tiles % 2 == 0) else 1
    tiles_per_part = num_tiles // num_parts
    needs_mask = (n % tile_rows) != 0

    kernel = functools.partial(
        _fast_mmd_kernel, tile_rows=tile_rows, n_rows=n,
        tiles_per_part=tiles_per_part, needs_mask=needs_mask)

    # Rough VMEM footprint; only override the scoped default when needed.
    # (w/b are resident but still double-buffered by the pipeline; for very
    # large F_in*F_out add an F_out grid axis so the w tile also fits v7x's
    # smaller VMEM.)
    est_bytes = 4 * (2 * 2 * tile_rows * f_in        # z1/z2 tiles, 2 buffers
                     + 2 * (f_in + 1) * f_out        # w, b
                     + 2 * num_parts * f_out         # partial outputs
                     + 6 * tile_rows * f_out)        # proj/cos/diff temporaries
    vmem_limit = None
    if est_bytes > 14 * 1024 * 1024:
        vmem_limit = min(2 * est_bytes, 64 * 1024 * 1024)

    row_index = lambda p, i: (p * tiles_per_part + i, 0)

    partials = pl.pallas_call(
        kernel,
        out_shape=jax.ShapeDtypeStruct((num_parts, 1, f_out), jnp.float32),
        grid_spec=pltpu.PrefetchScalarGridSpec(
            num_scalar_prefetch=0,
            grid=(num_parts, tiles_per_part),
            in_specs=[
                pl.BlockSpec((tile_rows, f_in), row_index),        # z1 tile
                pl.BlockSpec((tile_rows, f_in), row_index),        # z2 tile
                pl.BlockSpec((f_in, f_out), lambda p, i: (0, 0)),  # w (resident)
                pl.BlockSpec((1, f_out), lambda p, i: (0, 0)),     # b (resident)
            ],
            out_specs=pl.BlockSpec((1, 1, f_out), lambda p, i: (p, 0, 0)),
        ),
        # Row-reduction axis last ("arbitrary"); part axis "parallel" so the
        # v7x megacore splits it across its two TensorCores.
        compiler_params=pltpu.CompilerParams(
            dimension_semantics=("parallel", "arbitrary"),
            vmem_limit_bytes=vmem_limit),
    )(z1, z2, w_s, b_s)

    # Tiny O(F_out) combine + norm in plain JAX:
    #   || (outer/N) * (colsum(cos1) - colsum(cos2)) ||_2
    d = (outer_scale / n) * jnp.sum(partials, axis=(0, 1))
    return jnp.sqrt(jnp.sum(d * d))


def fast_mmd_reference(z1, z2, w, b, *, gamma):
    f_out = w.shape[1]

    def psi(x):
        return (math.sqrt(2.0 / f_out)
                * jnp.cos(math.sqrt(2.0 / gamma) * (x @ w + b)))

    d = psi(z1).mean(axis=0) - psi(z2).mean(axis=0)
    return jnp.sqrt(jnp.sum(d * d))


if __name__ == "__main__":
    # Small shapes consistent with the module's forward: z1, z2 are (N, F_in).
    N, F_IN, F_OUT = 16, 32, 128
    GAMMA = 1.0

    key = jax.random.PRNGKey(0)
    k_z1, k_z2, k_w, k_b = jax.random.split(key, 4)

    z1 = jax.random.normal(k_z1, (N, F_IN), dtype=jnp.float32)
    z2 = jax.random.normal(k_z2, (N, F_IN), dtype=jnp.float32) + 0.5

    # TODO(synk): the PyTorch module re-draws w ~ N(0,1), b ~ U(0, 2*pi) every
    # forward; here they are explicit deterministic inputs built from a fixed key.
    w = jax.random.normal(k_w, (F_IN, F_OUT), dtype=jnp.float32)
    b = jax.random.uniform(k_b, (F_OUT,), dtype=jnp.float32,
                           minval=0.0, maxval=2.0 * math.pi)

    result = fast_mmd(z1, z2, w, b, gamma=GAMMA)
    result = jax.block_until_ready(result)

    expected = fast_mmd_reference(z1, z2, w, b, gamma=GAMMA)
    assert jnp.allclose(result, expected, rtol=1e-5, atol=1e-5), (result, expected)

    print("KERNEL_OK")
</pallas_src>

<mosaic_0001>
module attributes {stable_mosaic.version = 11 : i64} {
  func.func @_fast_mmd_kernel(%arg0: i32, %arg1: i32, %arg2: memref<16x32xf32, #tpu.memory_space<vmem>>, %arg3: memref<16x32xf32, #tpu.memory_space<vmem>>, %arg4: memref<32x128xf32, #tpu.memory_space<vmem>>, %arg5: memref<1x128xf32, #tpu.memory_space<vmem>>, %arg6: memref<1x1x128xf32, #tpu.memory_space<vmem>>) attributes {dimension_semantics = [#tpu.dimension_semantics<parallel>, #tpu.dimension_semantics<arbitrary>], iteration_bounds = array<i64: 1, 1>, scalar_prefetch = 0 : i64, scratch_operands = 0 : i64, tpu.core_type = #tpu.core_type<tc>, window_params = [{transform_indices = @transform_0, window_bounds = array<i64: 16, 32>}, {transform_indices = @transform_1, window_bounds = array<i64: 16, 32>}, {pipeline_mode = #tpu.pipeline_mode<synchronous>, transform_indices = @transform_2, window_bounds = array<i64: 32, 128>}, {pipeline_mode = #tpu.pipeline_mode<synchronous>, transform_indices = @transform_3, window_bounds = array<i64: 1, 128>}, {transform_indices = @transform_4, window_bounds = array<i64: 1, 1, 128>}]} {
    %c0_i32 = arith.constant 0 : i32
    %0 = arith.cmpi eq, %arg1, %c0_i32 : i32
    %1 = arith.extui %0 : i1 to i32
    %c0_i32_0 = arith.constant 0 : i32
    %2 = arith.cmpi ne, %1, %c0_i32_0 : i32
    scf.if %2 {
      %cst_17 = arith.constant 0.000000e+00 : f32
      %22 = vector.broadcast %cst_17 : f32 to vector<1x1x128xf32>
      %c0_18 = arith.constant 0 : index
      %c0_19 = arith.constant 0 : index
      %c0_20 = arith.constant 0 : index
      %23 = vector.load %arg6[%c0_18, %c0_19, %c0_20] : memref<1x1x128xf32, #tpu.memory_space<vmem>>, vector<1x1x128xf32>
      tpu.vector_store %arg6[%c0_18, %c0_19, %c0_20], %22 {strides = array<i32>} : memref<1x1x128xf32, #tpu.memory_space<vmem>>, vector<1x1x128xf32>,
    } else {
    }
    %c0 = arith.constant 0 : index
    %c0_1 = arith.constant 0 : index
    %3 = vector.load %arg4[%c0, %c0_1] : memref<32x128xf32, #tpu.memory_space<vmem>>, vector<32x128xf32>
    %c0_2 = arith.constant 0 : index
    %c0_3 = arith.constant 0 : index
    %4 = vector.load %arg5[%c0_2, %c0_3] : memref<1x128xf32, #tpu.memory_space<vmem>>, vector<1x128xf32>
    %c0_4 = arith.constant 0 : index
    %c0_5 = arith.constant 0 : index
    %5 = vector.load %arg2[%c0_4, %c0_5] : memref<16x32xf32, #tpu.memory_space<vmem>>, vector<16x32xf32>
    %cst = arith.constant dense<0.000000e+00> : vector<16x128xf32>
    %6 = tpu.matmul %5, %3, %cst {dimension_numbers = #tpu.dot_dimension_numbers<[1], [0], [0], [1], [0, 0, 1, 1], [], []>} : vector<16x32xf32>, vector<32x128xf32>, vector<16x128xf32> -> vector<16x128xf32>
    %7 = vector.broadcast %4 : vector<1x128xf32> to vector<16x128xf32>
    %8 = arith.addf %6, %7 : vector<16x128xf32>
    %c0_6 = arith.constant 0 : index
    %c0_7 = arith.constant 0 : index
    %9 = vector.load %arg3[%c0_6, %c0_7] : memref<16x32xf32, #tpu.memory_space<vmem>>, vector<16x32xf32>
    %cst_8 = arith.constant dense<0.000000e+00> : vector<16x128xf32>
    %10 = tpu.matmul %9, %3, %cst_8 {dimension_numbers = #tpu.dot_dimension_numbers<[1], [0], [0], [1], [0, 0, 1, 1], [], []>} : vector<16x32xf32>, vector<32x128xf32>, vector<16x128xf32> -> vector<16x128xf32>
    %11 = vector.broadcast %4 : vector<1x128xf32> to vector<16x128xf32>
    %12 = arith.addf %10, %11 : vector<16x128xf32>
    %13 = math.cos %8 : vector<16x128xf32>
    %14 = math.cos %12 : vector<16x128xf32>
    %15 = arith.subf %13, %14 : vector<16x128xf32>
    %cst_9 = arith.constant 1.000000e+00 : f32
    %16 = vector.broadcast %cst_9 : f32 to vector<1x16xf32>
    %cst_10 = arith.constant dense<0.000000e+00> : vector<1x128xf32>
    %17 = tpu.matmul %16, %15, %cst_10 {dimension_numbers = #tpu.dot_dimension_numbers<[1], [0], [0], [1], [0, 0, 1, 1], [], []>} : vector<1x16xf32>, vector<16x128xf32>, vector<1x128xf32> -> vector<1x128xf32>
    %c0_11 = arith.constant 0 : index
    %c0_12 = arith.constant 0 : index
    %c0_13 = arith.constant 0 : index
    %18 = vector.load %arg6[%c0_11, %c0_12, %c0_13] : memref<1x1x128xf32, #tpu.memory_space<vmem>>, vector<1x1x128xf32>
    %19 = vector.shape_cast %17 : vector<1x128xf32> to vector<1x1x128xf32>
    %20 = arith.addf %18, %19 : vector<1x1x128xf32>
    %c0_14 = arith.constant 0 : index
    %c0_15 = arith.constant 0 : index
    %c0_16 = arith.constant 0 : index
    %21 = vector.load %arg6[%c0_14, %c0_15, %c0_16] : memref<1x1x128xf32, #tpu.memory_space<vmem>>, vector<1x1x128xf32>
    tpu.vector_store %arg6[%c0_14, %c0_15, %c0_16], %20 {strides = array<i32>} : memref<1x1x128xf32, #tpu.memory_space<vmem>>, vector<1x1x128xf32>,
    return
  }
  func.func @transform_0(%arg0: i32, %arg1: i32) -> (i32, i32) {
    %c1_i32 = arith.constant 1 : i32
    %0 = arith.muli %arg0, %c1_i32 : i32
    %1 = arith.addi %0, %arg1 : i32
    %c0_i32 = arith.constant 0 : i32
    %c0_i32_0 = arith.constant 0 : i32
    return %1, %c0_i32 : i32, i32
  }
  func.func @transform_1(%arg0: i32, %arg1: i32) -> (i32, i32) {
    %c1_i32 = arith.constant 1 : i32
    %0 = arith.muli %arg0, %c1_i32 : i32
    %1 = arith.addi %0, %arg1 : i32
    %c0_i32 = arith.constant 0 : i32
    %c0_i32_0 = arith.constant 0 : i32
    return %1, %c0_i32 : i32, i32
  }
  func.func @transform_2(%arg0: i32, %arg1: i32) -> (i32, i32) {
    %c0_i32 = arith.constant 0 : i32
    %c0_i32_0 = arith.constant 0 : i32
    %c0_i32_1 = arith.constant 0 : i32
    return %c0_i32, %c0_i32_0 : i32, i32
  }
  func.func @transform_3(%arg0: i32, %arg1: i32) -> (i32, i32) {
    %c0_i32 = arith.constant 0 : i32
    %c0_i32_0 = arith.constant 0 : i32
    %c0_i32_1 = arith.constant 0 : i32
    return %c0_i32, %c0_i32_0 : i32, i32
  }
  func.func @transform_4(%arg0: i32, %arg1: i32) -> (i32, i32, i32) {
    %c0_i32 = arith.constant 0 : i32
    %c0_i32_0 = arith.constant 0 : i32
    %c0_i32_1 = arith.constant 0 : i32
    return %arg0, %c0_i32, %c0_i32_0 : i32, i32, i32
  }
}

</mosaic_0001>

<bundles_post_ra>
// kernel: tpu_custom_call.1
= control target key start
LH: loop header
LB: loop body
LE: loop exit
PB: predicated region body
PF: predicated region fallthrough
CT: control target
= control target key end

     0   :  { %9 = vsyncpa [#allocation3], 0  ;;  %s1327_s0 = inlined_call_operand.hbm [shape: f32[16,32], index: 0, kind: input, shape index: {}]   ;;  %s1328_s1 = inlined_call_operand.hbm [shape: f32[16,32], index: 1, kind: input, shape index: {}]   ;;  %s1329_s2 = inlined_call_operand.hbm [shape: f32[32,128], index: 2, kind: input, shape index: {}]   ;;  %s1330_s3 = inlined_call_operand.vmem [shape: f32[1,128], index: 3, kind: input, shape index: {}]   ;;  %s1331_s4 = inlined_call_operand.hbm [shape: f32[1,1,128], index: 4, kind: output, shape index: {}]  }
   0x1   :  { %10 = vsyncpa [#allocation6], 0 }
   0x2   :  { %11 = vsyncpa [#allocation4], 0  ;;  %s960_s15 = smov [#allocation5]   ;;  %s961_s17 = smov [#allocation2]  }
   0x3   :  { %s37_s16 = sshll.u32 %s960_s15, 4  ;;  %s21_s18 = sshll.u32 %s961_s17, 4  ;;  %s38_s16 = int_to_ptr.vmem [resolvable:$true] %s37_s16  ;;  %s22_s18 = int_to_ptr.vmem [resolvable:$true] %s21_s18 }
   0x4   :  { %s882_s19 = scalar_lea.vmem %s38_s16, 256  ;;  %p887_p1 = scmp.lt.s32.totalorder %s38_s16, %s38_s16 }
   0x5   :  { %p883_p0 = scmp.ne.s32.totalorder %s38_s16, %s882_s19  ;;  %p888_p2 = scmp.lt.s32.totalorder %s882_s19, %s882_s19 }
   0x7   :  { %p889_p3 = por %p888_p2, %p887_p1 }
   0x9   :  { %p890_p4 = pnand %p889_p3, %p883_p0 }
   0xb   :  { %893 = shalt.err (!%p890_p4)
}
   0xc   :  { %s962_s20 = smov 128   ;;  %s963_s21 = smov 8  }
   0xd   :  { %43 = dma.hbm_to_vmem [thread:$0]  %s1328_s1, 256, %s38_s16, [#allocation6], %s962_s20, %s962_s20, %s963_s21  }
   0xe   :  { %s902_s24 = scalar_lea.vmem %s22_s18, 256  ;;  %p907_p6 = scmp.lt.s32.totalorder %s22_s18, %s22_s18 }
   0xf   :  { %p903_p5 = scmp.ne.s32.totalorder %s22_s18, %s902_s24  ;;  %p908_p7 = scmp.lt.s32.totalorder %s902_s24, %s902_s24 }
  0x11   :  { %p909_p8 = por %p908_p7, %p907_p6 }
  0x13   :  { %p910_p9 = pnand %p909_p8, %p903_p5 }
  0x15   :  { %913 = shalt.err (!%p910_p9)
}
  0x16   :  { %27 = dma.hbm_to_vmem [thread:$0]  %s1327_s0, 256, %s22_s18, [#allocation3], %s962_s20, %s962_s20, %s963_s21  }
  0x17   :  { %s964_s27 = smov [#allocation7]  }
  0x18   :  { %s49_s28 = sshll.u32 %s964_s27, 4  ;;  %s50_s28 = int_to_ptr.vmem [resolvable:$true] %s49_s28 }
  0x19   :  { %s922_s29 = scalar_lea.vmem %s50_s28, 512  ;;  %p927_p11 = scmp.lt.s32.totalorder %s50_s28, %s50_s28 }
  0x1a   :  { %p923_p10 = scmp.ne.s32.totalorder %s50_s28, %s922_s29  ;;  %p928_p12 = scmp.lt.s32.totalorder %s922_s29, %s922_s29 }
  0x1c   :  { %p929_p13 = por %p928_p12, %p927_p11 }
  0x1e   :  { %p930_p0 = pnand %p929_p13, %p923_p10 }
  0x20   :  { %933 = shalt.err (!%p930_p0)
}
  0x21   :  { %55 = dma.hbm_to_vmem [thread:$0]  %s1329_s2, 512, %s50_s28, [#allocation6], %s962_s20, %s962_s20, %s963_s21  }
  0x22   :  { %954 = dma.done.wait [#allocation3], 256  }
  0x23   :  { %955 = vsyncadd [#allocation3], 4294967040 }
  0x24   :  { %956 = dma.done.wait [#allocation6], 768  }
  0x25   :  { %957 = vsyncadd [#allocation6], 4294966528  ;;  %v79_v0 = vld [vmem:[#allocation7 + $0x18] sm:$0xff]  ;;  %v78_v1 = vld [vmem:[#allocation7 + $0x10] sm:$0xff]  ;;  %vm89_vm0 = vcmask 261120   ;;  %v965_v8 = vmov 0.0  }
  0x26   :  { %798 = vmatprep.subr.mxu0 %v79_v0  ;;  %809 = vmatprep.subr.mxu1 %v79_v0  ;;  %v77_v2 = vld [vmem:[#allocation7 + $0x8] sm:$0xff]  ;;  %v76_v3 = vld [vmem:[#allocation7] sm:$0xff]  ;;  %v171_v5 = vld [vmem:[#allocation5] sm:$0xff]  ;;  %75 = vst [vmem:[#allocation8] sm:$0x1] %v965_v8  ;;  %vm972_vm13 = vmmov 0  }
  0x27   :  { %799 = vmatpush3.msra.mxu0 %v79_v0  ;;  %810 = vmatpush3.msra.mxu1 %v79_v0  ;;  %v81_v4 = vld [vmem:[#allocation2] sm:$0xff]  ;;  %v82_v6 = vld [vmem:[#allocation2 + $0x8] sm:$0xff]  ;;  %v172_v7 = vld [vmem:[#allocation5 + $0x8] sm:$0xff]  ;;  %v966_v45 = vmov 683565275  }
  0x28   :  { %800 = vmatprep.subr.mxu0 %v78_v1  ;;  %811 = vmatprep.subr.mxu1 %v78_v1  ;;  %v761_v9 = vld [vmem:[%s1330_s3] ss:$0 sm:$0xff]  ;;  %v967_v49 = vmov 2475754826   ;;  %v968_v51 = vmov 2131351028  }
  0x29   :  { %801 = vmatpush3.msra.mxu0 %v78_v1  ;;  %812 = vmatpush3.msra.mxu1 %v78_v1  ;;  %v969_v53 = vmov 2102212464   ;;  %v970_v55 = vmov 920167782   ;;  %v971_v62 = vmov 1326507024  }
  0x2a   :  { %802 = vmatprep.subr.mxu0 %v77_v2  ;;  %813 = vmatprep.subr.mxu1 %v77_v2  ;;  %s974_s3 = smov [#allocation8]  }
  0x2b   :  { %803 = vmatpush3.msra.mxu0 %v77_v2  ;;  %814 = vmatpush3.msra.mxu1 %v77_v2  ;;  %s751_s5 = sshll.u32 %s974_s3, 4  ;;  %s752_s5 = int_to_ptr.vmem [resolvable:$true] %s751_s5 }
  0x2c   :  { %804 = vmatprep.subr.mxu0 %v76_v3  ;;  %815 = vmatprep.subr.mxu1 %v76_v3  ;;  %s934_s6 = scalar_lea.vmem %s752_s5, 16  ;;  %s938_s7 = scalar_lea.vmem %s752_s5, 32 }
  0x2d   :  { %805 = vmatpush3.msra.mxu0 %v76_v3  ;;  %806 = vmatprep.mubr.msk.f32.mxu0 %vm89_vm0, %v81_v4  ;;  %p935_p1 = scmp.ne.s32.totalorder %s752_s5, %s934_s6  ;;  %p939_p2 = scmp.lt.s32.totalorder %s752_s5, %s752_s5 }
  0x2e   :  { %816 = vmatpush3.msra.mxu1 %v76_v3  ;;  %817 = vmatprep.mubr.msk.f32.mxu1 %vm89_vm0, %v171_v5  ;;  %p940_p3 = scmp.lt.s32.totalorder %s938_s7, %s934_s6 }
  0x2f   :  { %807 = vmatmul.mubr.msk.f32.vlgmr.msra.gmra.mxu0 %vm89_vm0, %v82_v6  ;;  %818 = vmatmul.mubr.msk.f32.vlgmr.msra.gmra.mxu1 %vm89_vm0, %v172_v7 }
  0x30   :  { %820 = vmatprep.subr.mxu0 %v965_v8  ;;  %824 = vmatprep.mubr.msk.f32.mxu0 %vm972_vm13, %v965_v8  ;;  %p941_p4 = por %p940_p3, %p939_p2 }
  0x32   :  { %p942_p5 = pnand %p941_p4, %p935_p1 }
  0xef   :  { %v808_v10 = vpop.f32.mrf.mxu0  ;;  %v819_v11 = vpop.f32.mrf.mxu1 }
  0xf0   :  { %v1014_v12 = vadd.f32 %v808_v10, %v761_v9  ;;  %v1016_v13 = vadd.f32 %v819_v11, %v761_v9 }
  0xf1   :  { %v162_v14 = vpop.f32.mrf.mxu0  ;;  %v245_v33 = vpop.f32.mrf.mxu1 }
  0xf2   :  { %v357_v15 = vand.u32 2147483647, %v1014_v12  ;;  %v360_v16 = vand.u32 2139095040, %v1014_v12  ;;  %v563_v17 = vand.u32 2147483647, %v1016_v13  ;;  %v566_v18 = vand.u32 2139095040, %v1016_v13 }
  0xf3   :  { %v1022_v19 = vadd.f32 %v761_v9, %v162_v14  ;;  %v1030_v39 = vadd.f32 %v761_v9, %v245_v33 }
  0xf4   :  { %v361_v20 = vshrl.u32 %v360_v16, 23  ;;  %v364_v21 = vand.u32 8388607, %v357_v15  ;;  %v567_v22 = vshrl.u32 %v566_v18, 23  ;;  %v570_v23 = vand.u32 8388607, %v563_v17 }
  0xf5   :  { %v257_v25 = vand.u32 2139095040, %v1022_v19  ;;  %v254_v32 = vand.u32 2147483647, %v1022_v19 }
  0xf6   :  { %v770_v24 = vadd.s32 4294967169, %v361_v20  ;;  %v778_v26 = vadd.s32 4294967169, %v567_v22  ;;  %v365_v29 = vor.u32 8388608, %v364_v21  ;;  %v571_v30 = vor.u32 8388608, %v570_v23 }
  0xf7   :  { %v258_v28 = vshrl.u32 %v257_v25, 23  ;;  %v1038_v42 = vand.u32 8388607, %v254_v32 }
  0xf8   :  { %v367_v27 = vadd.s32 1, %v770_v24  ;;  %v573_v31 = vadd.s32 1, %v778_v26  ;;  %v1032_v40 = vshll.u32 %v365_v29, 8  ;;  %v1034_v41 = vshll.u32 %v571_v30, 8 }
  0xf9   :  { %v766_v34 = vadd.s32 4294967169, %v258_v28 }
  0xfa   :  { %vm368_vm1 = vcmp.gt.s32.totalorder %v367_v27, 0  ;;  %vm574_vm2 = vcmp.gt.s32.totalorder %v573_v31, 0 }
  0xfb   :  { %v369_v35 = vsel %vm368_vm1, %v367_v27, 0  ;;  %v575_v38 = vsel %vm574_vm2, %v573_v31, 0  ;;  %v1040_v43 = vadd.s32 1, %v766_v34 }
  0xfc   :  { %v370_v36 = vshrl.u32 %v369_v35, 5  ;;  %v371_v37 = vand.u32 31, %v369_v35  ;;  %v1043_v47 = vshrl.u32 %v575_v38, 5  ;;  %v577_v48 = vand.u32 31, %v575_v38 }
  0xfd   :  { %vm265_vm12 = vcmp.gt.s32.totalorder %v1040_v43, 0 }
  0xfe   :  { %v372_v44 = vsub.s32 32, %v371_v37  ;;  %v374_v46 = vshll.u32 %v966_v45, %v371_v37  ;;  %v377_v50 = vshll.u32 %v967_v49, %v371_v37  ;;  %v380_v52 = vshll.u32 %v968_v51, %v371_v37 }
  0xff   :  { %v383_v54 = vshll.u32 %v969_v53, %v371_v37  ;;  %v386_v56 = vshll.u32 %v970_v55, %v371_v37  ;;  %vm389_vm3 = vcmp.lt.s32.totalorder %v370_v36, 1  ;;  %vm390_vm4 = vcmp.lt.s32.totalorder %v370_v36, 2 }
 0x100   :  { %v375_v57 = vshrl.u32 %v967_v49, %v372_v44  ;;  %v378_v58 = vshrl.u32 %v968_v51, %v372_v44  ;;  %v381_v59 = vshrl.u32 %v969_v53, %v372_v44  ;;  %v373_v60 = vshrl.u32 %v966_v45, %v372_v44 }
 0x101   :  { %v384_v61 = vshrl.u32 %v970_v55, %v372_v44  ;;  %v387_v63 = vshrl.u32 %v971_v62, %v372_v44  ;;  %v578_v3 = vsub.s32 32, %v577_v48  ;;  %vm391_vm5 = vcmp.lt.s32.totalorder %v370_v36, 3 }
 0x102   :  { %v376_v0 = vor.u32 %v375_v57, %v374_v46  ;;  %v379_v1 = vor.u32 %v378_v58, %v377_v50  ;;  %v382_v2 = vor.u32 %v381_v59, %v380_v52  ;;  %vm392_vm6 = vcmp.lt.s32.totalorder %v370_v36, 4 }
 0x103   :  { %v385_v4 = vor.u32 %v384_v61, %v383_v54  ;;  %v388_v5 = vor.u32 %v387_v63, %v386_v56  ;;  %v580_v18 = vshll.u32 %v966_v45, %v577_v48  ;;  %v581_v22 = vshrl.u32 %v967_v49, %v578_v3 }
 0x104   :  { %v393_v6 = vsel %vm389_vm3, %v373_v60, %v376_v0  ;;  %v394_v7 = vsel %vm392_vm6, %v382_v2, 2102212464  ;;  %v397_v9 = vsel %vm389_vm3, %v376_v0, %v379_v1  ;;  %v401_v10 = vsel %vm389_vm3, %v379_v1, %v382_v2 }
 0x105   :  { %v395_v11 = vsel %vm391_vm5, %v379_v1, %v394_v7  ;;  %v398_v14 = vsel %vm392_vm6, %v385_v4, 920167782  ;;  %v402_v16 = vsel %vm392_vm6, %v388_v5, 1326507024  ;;  %v583_v23 = vshll.u32 %v967_v49, %v577_v48 }
 0x106   :  { %v399_v20 = vsel %vm391_vm5, %v382_v2, %v398_v14  ;;  %v403_v21 = vsel %vm391_vm5, %v385_v4, %v402_v16  ;;  %v396_v24 = vsel %vm390_vm4, %v393_v6, %v395_v11  ;;  %v584_v27 = vshrl.u32 %v968_v51, %v578_v3 }
 0x107   :  { %v400_v25 = vsel %vm390_vm4, %v397_v9, %v399_v20  ;;  %v404_v26 = vsel %vm390_vm4, %v401_v10, %v403_v21  ;;  %v582_v33 = vor.u32 %v581_v22, %v580_v18  ;;  %v586_v35 = vshll.u32 %v968_v51, %v577_v48 }
 0x108   :  { %v1066_v28 = vmul.u32.u64.low %v1032_v40, %v404_v26  ;;  %v1067_v29 = vmul.u32.u64.high %v1032_v40, %v404_v26, %v1066_v28  ;;  %v1070_v30 = vmul.u32.u64.low %v1032_v40, %v400_v25  ;;  %v1071_v31 = vmul.u32.u64.high %v1032_v40, %v400_v25, %v1070_v30 }
 0x109   :  { %v585_v34 = vor.u32 %v584_v27, %v583_v23  ;;  %v587_v37 = vshrl.u32 %v969_v53, %v578_v3  ;;  %v579_v36 = vshrl.u32 %v966_v45, %v578_v3  ;;  %v589_v38 = vshll.u32 %v969_v53, %v577_v48 }
 0x10a   :  { %v590_v44 = vshrl.u32 %v970_v55, %v578_v3  ;;  %v593_v46 = vshrl.u32 %v971_v62, %v578_v3  ;;  %v412_v50 = vmul.u32 %v1032_v40, %v396_v24  ;;  %v592_v54 = vshll.u32 %v970_v55, %v577_v48 }
 0x10b   :  { %v588_v52 = vor.u32 %v587_v37, %v586_v35  ;;  %vm595_vm7 = vcmp.lt.s32.totalorder %v1043_v47, 1  ;;  %vm414_vm8 = vc.u32 %v1067_v29, %v1070_v30  ;;  %v415_v56 = vadd.s32 1, %v1071_v31 }
 0x10c   :  { %v591_v57 = vor.u32 %v590_v44, %v589_v38  ;;  %vm596_vm9 = vcmp.lt.s32.totalorder %v1043_v47, 2  ;;  %v594_v58 = vor.u32 %v593_v46, %v592_v54  ;;  %vm597_vm10 = vcmp.lt.s32.totalorder %v1043_v47, 3 }
 0x10d   :  { %vm598_vm11 = vcmp.lt.s32.totalorder %v1043_v47, 4  ;;  %v603_v59 = vsel %vm595_vm7, %v582_v33, %v585_v34  ;;  %v416_v40 = vsel %vm414_vm8, %v415_v56, %v1071_v31  ;;  %v607_v61 = vsel %vm595_vm7, %v585_v34, %v588_v52 }
 0x10e   :  { %v600_v60 = vsel %vm598_vm11, %v588_v52, 2102212464  ;;  %v604_v48 = vsel %vm598_vm11, %v591_v57, 920167782  ;;  %v417_v63 = vadd.s32 %v416_v40, %v412_v50  ;;  %v599_v0 = vsel %vm595_vm7, %v579_v36, %v582_v33 }
 0x10f   :  { %v605_v1 = vsel %vm597_vm10, %v588_v52, %v604_v48  ;;  %v608_v2 = vsel %vm598_vm11, %v594_v58, 1326507024  ;;  %v601_v3 = vsel %vm597_vm10, %v585_v34, %v600_v60  ;;  %v266_v16 = vsel %vm265_vm12, %v1040_v43, 0 }
 0x110   :  { %v606_v4 = vsel %vm596_vm9, %v603_v59, %v605_v1  ;;  %v609_v5 = vsel %vm597_vm10, %v591_v57, %v608_v2  ;;  %v418_v6 = vadd.s32 536870912, %v417_v63  ;;  %v460_v18 = vand.u32 2147483647, %v1030_v39 }
 0x111   :  { %v610_v7 = vsel %vm596_vm9, %v607_v61, %v609_v5  ;;  %v1096_v9 = vmul.u32.u64.low %v1034_v41, %v606_v4  ;;  %v1097_v10 = vmul.u32.u64.high %v1034_v41, %v606_v4, %v1096_v9  ;;  %v602_v21 = vsel %vm596_vm9, %v599_v0, %v601_v3 }
 0x112   :  { %v1101_v11 = vmul.u32.u64.low %v1034_v41, %v610_v7  ;;  %v1102_v14 = vmul.u32.u64.high %v1034_v41, %v610_v7, %v1101_v11  ;;  %v1106_v20 = vshrl.u32 %v418_v6, 30  ;;  %v262_v22 = vor.u32 8388608, %v1038_v42 }
 0x113   :  { %v268_v23 = vand.u32 31, %v266_v16  ;;  %v621_v25 = vadd.s32 1, %v1097_v10  ;;  %v618_v43 = vmul.u32 %v1034_v41, %v602_v21  ;;  %v463_v27 = vand.u32 2139095040, %v1030_v39 }
 0x114   :  { %v420_v24 = vshll.u32 %v1106_v20, 30  ;;  %vm620_vm14 = vc.u32 %v1102_v14, %v1096_v9  ;;  %v1120_v47 = vand.u32 8388607, %v460_v18  ;;  %v267_v31 = vshrl.u32 %v266_v16, 5 }
 0x115   :  { %v269_v26 = vsub.s32 32, %v268_v23  ;;  %v622_v28 = vsel %vm620_vm14, %v621_v25, %v1097_v10  ;;  %v1125_v33 = vshll.u32 %v262_v22, 8  ;;  %v271_v35 = vshll.u32 %v966_v45, %v268_v23 }
 0x116   :  { %v1122_v42 = vsub.s32 %v417_v63, %v420_v24  ;;  %v623_v34 = vadd.s32 %v622_v28, %v618_v43  ;;  %v274_v38 = vshll.u32 %v967_v49, %v268_v23  ;;  %v277_v44 = vshll.u32 %v968_v51, %v268_v23 }
 0x117   :  { %v272_v41 = vshrl.u32 %v967_v49, %v269_v26  ;;  %v275_v37 = vshrl.u32 %v968_v51, %v269_v26  ;;  %v278_v46 = vshrl.u32 %v969_v53, %v269_v26  ;;  %v280_v54 = vshll.u32 %v969_v53, %v268_v23 }
 0x118   :  { %v423_v36 = vsub.s32 0, %v1122_v42  ;;  %v624_v50 = vadd.s32 536870912, %v623_v34  ;;  %v281_v56 = vshrl.u32 %v970_v55, %v269_v26  ;;  %v284_v40 = vshrl.u32 %v971_v62, %v269_v26 }
 0x119   :  { %v273_v52 = vor.u32 %v272_v41, %v271_v35  ;;  %v276_v58 = vor.u32 %v275_v37, %v274_v38  ;;  %v279_v59 = vor.u32 %v278_v46, %v277_v44  ;;  %v283_v61 = vshll.u32 %v970_v55, %v268_v23 }
 0x11a   :  { %v771_v57 = vmin.u32 %v423_v36, %v1122_v42  ;;  %v1138_v60 = vshrl.u32 %v624_v50, 30  ;;  %v282_v48 = vor.u32 %v281_v56, %v280_v54  ;;  %v464_v63 = vshrl.u32 %v463_v27, 23 }
 0x11b   :  { %v413_v0 = vadd.s32 %v1070_v30, %v1067_v29  ;;  %v270_v2 = vshrl.u32 %v966_v45, %v269_v26  ;;  %vm286_vm15 = vcmp.lt.s32.totalorder %v267_v31, 1  ;;  %v285_v4 = vor.u32 %v284_v40, %v283_v61 }
 0x11c   :  { %v425_v1 = vclz %v771_v57  ;;  %v626_v3 = vshll.u32 %v1138_v60, 30  ;;  %vm288_vm0 = vcmp.lt.s32.totalorder %v267_v31, 3  ;;  %vm289_vm1 = vcmp.lt.s32.totalorder %v267_v31, 4 }
 0x11d   :  { %v291_v6 = vsel %vm289_vm1, %v279_v59, 2102212464  ;;  %v294_v7 = vsel %vm286_vm15, %v273_v52, %v276_v58  ;;  %v295_v10 = vsel %vm289_vm1, %v282_v48, 920167782  ;;  %vm287_vm2 = vcmp.lt.s32.totalorder %v267_v31, 2 }
 0x11e   :  { %v772_v5 = vadd.s32 4294967294, %v425_v1  ;;  %v1148_v11 = vsub.s32 %v623_v34, %v626_v3  ;;  %v296_v29 = vsel %vm288_vm0, %v279_v59, %v295_v10  ;;  %v774_v30 = vadd.s32 4294967169, %v464_v63 }
 0x11f   :  { %v290_v16 = vsel %vm286_vm15, %v270_v2, %v273_v52  ;;  %v297_v21 = vsel %vm287_vm2, %v294_v7, %v296_v29  ;;  %v298_v22 = vsel %vm286_vm15, %v276_v58, %v279_v59  ;;  %v292_v25 = vsel %vm288_vm0, %v276_v58, %v291_v6 }
 0x120   :  { %vm773_vm3 = vcmp.lt.s32.totalorder %v772_v5, 0  ;;  %v629_v24 = vsub.s32 0, %v1148_v11  ;;  %v299_v26 = vsel %vm289_vm1, %v285_v4, 1326507024  ;;  %v470_v54 = vadd.s32 1, %v774_v30 }
 0x121   :  { %v428_v23 = vsel %vm773_vm3, 0, %v772_v5  ;;  %v300_v34 = vsel %vm288_vm0, %v282_v48, %v299_v26  ;;  %v1162_v37 = vmul.u32.u64.low %v1125_v33, %v297_v21  ;;  %v1163_v36 = vmul.u32.u64.high %v1125_v33, %v297_v21, %v1162_v37 }
 0x122   :  { %v429_v43 = vsub.s32 32, %v428_v23  ;;  %v430_v27 = vshll.u32 %v1122_v42, %v428_v23  ;;  %v433_v28 = vsub.s32 4294967266, %v428_v23  ;;  %v779_v35 = vmin.u32 %v629_v24, %v1148_v11 }
 0x123   :  { %v301_v41 = vsel %vm287_vm2, %v298_v22, %v300_v34  ;;  %v293_v42 = vsel %vm287_vm2, %v290_v16, %v292_v25  ;;  %vm359_vm4 = vcmp.lt.s32.totalorder %v1014_v12, 0  ;;  %v312_v59 = vadd.s32 1, %v1163_v36 }
 0x124   :  { %v431_v38 = vshrl.u32 %v413_v0, %v429_v43  ;;  %v434_v44 = vadd.s32 127, %v433_v28  ;;  %v1167_v46 = vmul.u32.u64.low %v1125_v33, %v301_v41  ;;  %v1168_v50 = vmul.u32.u64.high %v1125_v33, %v301_v41, %v1167_v46 }
 0x125   :  { %v631_v52 = vclz %v779_v35  ;;  %v468_v40 = vor.u32 8388608, %v1120_v47  ;;  %vm471_vm5 = vcmp.gt.s32.totalorder %v470_v54, 0  ;;  %v443_v61 = vsub.s32 4, %v1106_v20 }
 0x126   :  { %v432_v56 = vor.u32 %v431_v38, %v430_v27  ;;  %v435_v57 = vshll.u32 %v434_v44, 23  ;;  %v309_v63 = vmul.u32 %v1125_v33, %v293_v42  ;;  %vm311_vm6 = vc.u32 %v1168_v50, %v1162_v37 }
 0x127   :  { %v780_v58 = vadd.s32 4294967294, %v631_v52  ;;  %v619_v31 = vadd.s32 %v1096_v9, %v1102_v14  ;;  %v313_v0 = vsel %vm311_vm6, %v312_v59, %v1163_v36  ;;  %v472_v1 = vsel %vm471_vm5, %v470_v54, 0 }
 0x128   :  { %v436_v48 = vor.u32 4788187, %v435_v57  ;;  %v439_v3 = vcvt.s32.f32 %v432_v56  ;;  %v314_v47 = vadd.s32 %v313_v0, %v309_v63  ;;  %v1181_v7 = vshrl.u32 %v472_v1, 5 }
 0x129   :  { %vm781_vm7 = vcmp.lt.s32.totalorder %v780_v58, 0  ;;  %v474_v10 = vand.u32 31, %v472_v1  ;;  %vm1185_vm8 = vcmp.le.f32.partialorder %v357_v15, 0.7853982  ;;  %v1192_v14 = vsel %vm359_vm4, %v443_v61, %v1106_v20 }
 0x12a   :  { %v437_v2 = vand.u32 2147483647, %v436_v48  ;;  %v634_v4 = vsel %vm781_vm7, 0, %v780_v58  ;;  %v315_v29 = vadd.s32 536870912, %v314_v47  ;;  %v649_v24 = vsub.s32 4, %v1138_v60 }
 0x12b   :  { %v635_v5 = vsub.s32 32, %v634_v4  ;;  %v639_v6 = vsub.s32 4294967266, %v634_v4  ;;  %v636_v30 = vshll.u32 %v1148_v11, %v634_v4  ;;  %v475_v22 = vsub.s32 32, %v474_v10 }
 0x12c   :  { %v440_v9 = vmul.f32 %v439_v3, %v437_v2  ;;  %v1196_v25 = vshrl.u32 %v315_v29, 30  ;;  %v1198_v15 = vshll.u32 %v468_v40, 8  ;;  %vm492_vm9 = vcmp.lt.s32.totalorder %v1181_v7, 1 }
 0x12d   :  { %v637_v16 = vshrl.u32 %v619_v31, %v635_v5  ;;  %v640_v21 = vadd.s32 127, %v639_v6  ;;  %v478_v27 = vshrl.u32 %v967_v49, %v475_v22  ;;  %vm565_vm10 = vcmp.lt.s32.totalorder %v1016_v13, 0 }
 0x12e   :  { %v441_v23 = vxor.u32 2147483648, %v440_v9  ;;  %v317_v11 = vshll.u32 %v1196_v25, 30  ;;  %v477_v28 = vshll.u32 %v966_v45, %v474_v10  ;;  %v481_v34 = vshrl.u32 %v968_v51, %v475_v22 }
 0x12f   :  { %v638_v26 = vor.u32 %v637_v16, %v636_v30  ;;  %v641_v43 = vshll.u32 %v640_v21, 23  ;;  %vm1213_vm11 = vcmp.le.f32.partialorder %v563_v17, 0.7853982  ;;  %v480_v38 = vshll.u32 %v967_v49, %v474_v10 }
 0x130   :  { %v442_v20 = vsel %vm359_vm4, %v441_v23, %v440_v9  ;;  %v483_v44 = vshll.u32 %v968_v51, %v474_v10  ;;  %vm493_vm12 = vcmp.lt.s32.totalorder %v1181_v7, 2  ;;  %v1220_v52 = vsub.s32 %v314_v47, %v317_v11 }
 0x131   :  { %v445_v35 = vsel %vm1185_vm8, %v1014_v12, %v442_v20  ;;  %v642_v36 = vor.u32 4788187, %v641_v43  ;;  %v645_v46 = vcvt.s32.f32 %v638_v26  ;;  %v479_v42 = vor.u32 %v478_v27, %v477_v28 }
 0x132   :  { %858 = vcosq.f32 %v445_v35  ;;  %v482_v56 = vor.u32 %v481_v34, %v480_v38  ;;  %v484_v17 = vshrl.u32 %v969_v53, %v475_v22  ;;  %v320_v57 = vsub.s32 0, %v1220_v52 }
 0x133   :  { %860 = vsinq.f32 %v445_v35  ;;  %v643_v54 = vand.u32 2147483647, %v642_v36  ;;  %v476_v58 = vshrl.u32 %v966_v45, %v475_v22  ;;  %v486_v49 = vshll.u32 %v969_v53, %v474_v10 }
 0x134   :  { %v487_v51 = vshrl.u32 %v970_v55, %v475_v22  ;;  %v485_v40 = vor.u32 %v484_v17, %v483_v44  ;;  %v489_v48 = vshll.u32 %v970_v55, %v474_v10  ;;  %v490_v61 = vshrl.u32 %v971_v62, %v475_v22 }
 0x135   :  { %v646_v59 = vmul.f32 %v645_v46, %v643_v54  ;;  %v767_v63 = vmin.u32 %v320_v57, %v1220_v52  ;;  %vm494_vm13 = vcmp.lt.s32.totalorder %v1181_v7, 3  ;;  %vm495_vm14 = vcmp.lt.s32.totalorder %v1181_v7, 4 }
 0x136   :  { %v488_v31 = vor.u32 %v487_v51, %v486_v49  ;;  %v491_v1 = vor.u32 %v490_v61, %v489_v48  ;;  %v497_v45 = vsel %vm495_vm14, %v485_v40, 2102212464  ;;  %v500_v53 = vsel %vm492_vm9, %v479_v42, %v482_v56 }
 0x137   :  { %v647_v0 = vxor.u32 2147483648, %v646_v59  ;;  %v322_v2 = vclz %v767_v63  ;;  %v496_v3 = vsel %vm492_vm9, %v476_v58, %v479_v42  ;;  %v504_v62 = vsel %vm492_vm9, %v482_v56, %v485_v40 }
 0x138   :  { %v501_v55 = vsel %vm495_vm14, %v488_v31, 920167782  ;;  %v498_v47 = vsel %vm494_vm13, %v482_v56, %v497_v45  ;;  %v505_v6 = vsel %vm495_vm14, %v491_v1, 1326507024  ;;  %v446_v20 = vsel %vm1185_vm8, 0, %v1192_v14 }
 0x139   :  { %v648_v4 = vsel %vm565_vm10, %v647_v0, %v646_v59  ;;  %v502_v5 = vsel %vm494_vm13, %v485_v40, %v501_v55  ;;  %v768_v9 = vadd.s32 4294967294, %v322_v2  ;;  %v506_v30 = vsel %vm494_vm13, %v488_v31, %v505_v6 }
 0x13a   :  { %v651_v10 = vsel %vm1213_vm11, %v1016_v13, %v648_v4  ;;  %v503_v29 = vsel %vm493_vm12, %v500_v53, %v502_v5  ;;  %v507_v16 = vsel %vm493_vm12, %v504_v62, %v506_v30  ;;  %v499_v27 = vsel %vm493_vm12, %v496_v3, %v498_v47 }
 0x13b   :  { %862 = vcosq.f32 %v651_v10  ;;  %v1254_v21 = vmul.u32.u64.low %v1198_v15, %v503_v29  ;;  %v1255_v22 = vmul.u32.u64.high %v1198_v15, %v503_v29, %v1254_v21  ;;  %vm769_vm15 = vcmp.lt.s32.totalorder %v768_v9, 0 }
 0x13c   :  { %864 = vsinq.f32 %v651_v10  ;;  %v1259_v23 = vmul.u32.u64.low %v1198_v15, %v507_v16  ;;  %v1260_v26 = vmul.u32.u64.high %v1198_v15, %v507_v16, %v1259_v23  ;;  %v325_v43 = vsel %vm769_vm15, 0, %v768_v9 }
 0x13d   :  { %v650_v11 = vsel %vm565_vm10, %v649_v24, %v1138_v60  ;;  %v330_v28 = vsub.s32 4294967266, %v325_v43  ;;  %v518_v35 = vadd.s32 1, %v1255_v22  ;;  %v326_v38 = vsub.s32 32, %v325_v43 }
 0x13e   :  { %v515_v7 = vmul.u32 %v1198_v15, %v499_v27  ;;  %vm517_vm0 = vc.u32 %v1260_v26, %v1254_v21  ;;  %v652_v33 = vsel %vm1213_vm11, 0, %v650_v11  ;;  %v310_v14 = vadd.s32 %v1162_v37, %v1168_v50 }
 0x13f   :  { %v859_v34 = vpop.eup %858  ;;  %v331_v44 = vadd.s32 127, %v330_v28  ;;  %v519_v60 = vsel %vm517_vm0, %v518_v35, %v1255_v22  ;;  %v450_v24 = vand.u32 3, %v446_v20  ;;  %v327_v15 = vshll.u32 %v1220_v52, %v325_v43 }
 0x140   :  { %v861_v36 = vpop.eup %860  ;;  %v520_v42 = vadd.s32 %v519_v60, %v515_v7  ;;  %v456_v56 = vxor.u32 2147483648, %v859_v34  ;;  %v328_v17 = vshrl.u32 %v310_v14, %v326_v38  ;;  %v656_v58 = vand.u32 3, %v652_v33 }
 0x141   :  { %v332_v46 = vshll.u32 %v331_v44, 23  ;;  %v453_v54 = vxor.u32 2147483648, %v861_v36  ;;  %vm452_vm1 = vcmp.eq.s32.totalorder %v450_v24, 0  ;;  %vm455_vm2 = vcmp.eq.s32.totalorder %v450_v24, 2 }
 0x142   :  { %v521_v57 = vadd.s32 536870912, %v520_v42  ;;  %v457_v59 = vsel %vm455_vm2, %v456_v56, %v861_v36  ;;  %v329_v50 = vor.u32 %v328_v17, %v327_v15  ;;  %vm451_vm3 = vcmp.lt.s32.totalorder %v450_v24, 2 }
 0x143   :  { %v333_v49 = vor.u32 4788187, %v332_v46  ;;  %v454_v51 = vsel %vm452_vm1, %v859_v34, %v453_v54  ;;  %vm661_vm4 = vcmp.eq.s32.totalorder %v656_v58, 2  ;;  %vm449_vm5 = vweird.f32 %v1014_v12 }
 0x144   :  { %v1282_v41 = vshrl.u32 %v521_v57, 30  ;;  %v458_v61 = vsel %vm451_vm3, %v454_v51, %v457_v59  ;;  %vm657_vm6 = vcmp.lt.s32.totalorder %v656_v58, 2  ;;  %vm658_vm7 = vcmp.eq.s32.totalorder %v656_v58, 0 }
 0x145   :  { %v334_v31 = vand.u32 2147483647, %v333_v49  ;;  %v336_v45 = vcvt.s32.f32 %v329_v50  ;;  %v459_v2 = vsel %vm449_vm5, nan, %v458_v61  ;;  %vm655_vm8 = vweird.f32 %v1016_v13 }
 0x146   :  { %v523_v40 = vshll.u32 %v1282_v41, 30  ;;  %vm256_vm10 = vcmp.lt.s32.totalorder %v1022_v19, 0  ;;  %v516_v13 = vadd.s32 %v1254_v21, %v1260_v26  ;;  %vm1295_vm11 = vcmp.le.f32.partialorder %v254_v32, 0.7853982 }
 0x147   :  { %v337_v62 = vmul.f32 %v336_v45, %v334_v31  ;;  %v340_v32 = vsub.s32 4, %v1196_v25  ;;  %vm462_vm12 = vcmp.lt.s32.totalorder %v1030_v39, 0  ;;  %vm1306_vm13 = vcmp.le.f32.partialorder %v460_v18, 0.7853982  ;;  %v742_v31 = vld [vmem:[#allocation8] sm:$0x1] }
 0x148   :  { %v863_v37 = vpop.eup %862  ;;  %v524_v0 = vsub.s32 %v520_v42, %v523_v40  ;;  %v546_v33 = vsub.s32 4, %v1282_v41  ;;  %vm346_vm2 = vweird.f32 %v1022_v19  ;;  %vm552_vm5 = vweird.f32 %v1030_v39 }
 0x149   :  { %v865_v48 = vpop.eup %864  ;;  %v662_v63 = vxor.u32 2147483648, %v863_v37  ;;  %v338_v10 = vxor.u32 2147483648, %v337_v62  ;;  %v341_v7 = vsel %vm256_vm10, %v340_v32, %v1196_v25 }
 0x14a   :  { %v659_v1 = vxor.u32 2147483648, %v865_v48  ;;  %v526_v53 = vsub.s32 0, %v524_v0  ;;  %v343_v18 = vsel %vm1295_vm11, 0, %v341_v7  ;;  %v547_v24 = vsel %vm462_vm12, %v546_v33, %v1282_v41 }
 0x14b   :  { %v663_v52 = vsel %vm661_vm4, %v662_v63, %v865_v48  ;;  %v339_v29 = vsel %vm256_vm10, %v338_v10, %v337_v62  ;;  %v347_v46 = vand.u32 3, %v343_v18  ;;  %v549_v56 = vsel %vm1306_vm13, 0, %v547_v24 }
 0x14c   :  { %v660_v3 = vsel %vm658_vm7, %v863_v37, %v659_v1  ;;  %v775_v4 = vmin.u32 %v526_v53, %v524_v0  ;;  %v342_v27 = vsel %vm1295_vm11, %v1022_v19, %v339_v29  ;;  %v553_v57 = vand.u32 3, %v549_v56 }
 0x14d   :  { %v664_v55 = vsel %vm657_vm6, %v660_v3, %v663_v52  ;;  %866 = vcosq.f32 %v342_v27  ;;  %vm349_vm14 = vcmp.eq.s32.totalorder %v347_v46, 0  ;;  %vm352_vm15 = vcmp.eq.s32.totalorder %v347_v46, 2 }
 0x14e   :  { %v665_v47 = vsel %vm655_vm8, nan, %v664_v55  ;;  %v528_v6 = vclz %v775_v4  ;;  %868 = vsinq.f32 %v342_v27  ;;  %vm348_vm0 = vcmp.lt.s32.totalorder %v347_v46, 2 }
 0x14f   :  { %v667_v5 = vsub.f32 %v459_v2, %v665_v47  ;;  %vm558_vm1 = vcmp.eq.s32.totalorder %v553_v57, 2  ;;  %vm555_vm3 = vcmp.eq.s32.totalorder %v553_v57, 0  ;;  %vm554_vm4 = vcmp.lt.s32.totalorder %v553_v57, 2 }
 0x150   :  { %v776_v9 = vadd.s32 4294967294, %v528_v6  ;;  %vm668_vm6 = vcmask 130048   ;;  %v973_v63 = vmov 1.0  }
 0x151   :  { %821 = vmatpush3.msra.mxu0 %v667_v5 }
 0x152   :  { %822 = vmatprep.subr.mxu0 %v965_v8  ;;  %vm777_vm9 = vcmp.lt.s32.totalorder %v776_v9, 0 }
 0x153   :  { %v531_v12 = vsel %vm777_vm9, 0, %v776_v9 }
 0x154   :  { %v532_v30 = vsub.s32 32, %v531_v12  ;;  %v536_v16 = vsub.s32 4294967266, %v531_v12  ;;  %v533_v23 = vshll.u32 %v524_v0, %v531_v12 }
 0x156   :  { %v534_v8 = vshrl.u32 %v516_v13, %v532_v30  ;;  %v537_v43 = vadd.s32 127, %v536_v16 }
 0x158   :  { %v535_v20 = vor.u32 %v534_v8, %v533_v23  ;;  %v538_v11 = vshll.u32 %v537_v43, 23 }
 0x15a   :  { %v539_v28 = vor.u32 4788187, %v538_v11  ;;  %v542_v26 = vcvt.s32.f32 %v535_v20  ;;  %v867_v14 = vpop.eup %866 }
 0x15b   :  { %v869_v60 = vpop.eup %868  ;;  %v353_v54 = vxor.u32 2147483648, %v867_v14 }
 0x15c   :  { %v540_v21 = vand.u32 2147483647, %v539_v28  ;;  %v350_v42 = vxor.u32 2147483648, %v869_v60 }
 0x15d   :  { %v354_v17 = vsel %vm352_vm15, %v353_v54, %v869_v60 }
 0x15e   :  { %v543_v34 = vmul.f32 %v542_v26, %v540_v21  ;;  %v351_v25 = vsel %vm349_vm14, %v867_v14, %v350_v42 }
 0x15f   :  { %v355_v49 = vsel %vm348_vm0, %v351_v25, %v354_v17 }
 0x160   :  { %v544_v35 = vxor.u32 2147483648, %v543_v34  ;;  %v356_v37 = vsel %vm346_vm2, nan, %v355_v49 }
 0x162   :  { %v545_v38 = vsel %vm462_vm12, %v544_v35, %v543_v34 }
 0x163   :  { %v548_v44 = vsel %vm1306_vm13, %v1030_v39, %v545_v38 }
 0x164   :  { %870 = vcosq.f32 %v548_v44 }
 0x165   :  { %872 = vsinq.f32 %v548_v44 }
 0x171   :  { %v871_v15 = vpop.eup %870 }
 0x172   :  { %v873_v58 = vpop.eup %872  ;;  %v559_v51 = vxor.u32 2147483648, %v871_v15 }
 0x173   :  { %v556_v59 = vxor.u32 2147483648, %v873_v58 }
 0x174   :  { %v560_v41 = vsel %vm558_vm1, %v559_v51, %v873_v58 }
 0x175   :  { %v557_v50 = vsel %vm555_vm3, %v871_v15, %v556_v59 }
 0x176   :  { %v561_v40 = vsel %vm554_vm4, %v557_v50, %v560_v41 }
 0x177   :  { %v562_v48 = vsel %vm552_vm5, nan, %v561_v40 }
 0x178   :  { %v666_v61 = vsub.f32 %v356_v37, %v562_v48 }
 0x17a   :  { %823 = vmatpush3.msra.mxu0 %v666_v61 }
 0x17b   :  { %825 = vmatmul.mubr.msk.f32.vlgmr.msra.gmra.mxu0 %vm668_vm6, %v973_v63 }
 0x23b   :  { %v738_v0 = vpop.f32.mrf.mxu0 }
 0x23c   :  { %v743_v1 = vadd.f32 %v742_v31, %v738_v0 }
 0x23d   :  { %v826_v19 = vpop.f32.mrf.mxu0 }
 0x23e   :  { %744 = vst [vmem:[#allocation8] sm:$0x1] %v743_v1 }
 0x23f   :  { %945 = shalt.err (!%p942_p5)
}
 0x240   :  { %754 = dma.vmem_to_hbm [thread:$0]  %s752_s5, 16, %s1331_s4, [#allocation4]  }
 0x241   :  { %958 = dma.done.wait [#allocation4], 16  }
 0x242   :  { %959 = vsyncadd [#allocation4], 4294967280 }
 0x243   :  { %758 = vsyncpa [#allocation3], 1 }
 0x244   :  { %759 = vsyncpa [#allocation6], 1 }
 0x245   :  { %760 = vsyncpa [#allocation4], 1 }

</bundles_post_ra>
